<compile_context>
chip_gen: v5e
topology: v5e:2x2
jax: 0.10.0
libtpu: 0.0.40
codegen_flags: <defaults>
</compile_context>

<pallas_src>
import functools

import jax
import jax.numpy as jnp
from jax.experimental import pallas as pl
from jax.experimental.pallas import tpu as pltpu

IN_FEATURES = 4
OUT_FEATURES = 3


def _round_up(n, m):
    return ((n + m - 1) // m) * m


def linear_kernel(x_ref, w_ref, b_ref, o_ref):
    # x_ref: (TILE_B, IN) in VMEM; w_ref: (OUT, IN) in SMEM; b_ref: (OUT,) in
    # SMEM; o_ref: (TILE_B, OUT) in VMEM.
    x = x_ref[...]
    cols = []
    for j in range(OUT_FEATURES):
        # y[:, j] = b[j] + sum_k x[:, k] * w[j, k]   (pure VPU, scalars from SMEM)
        acc = x[:, 0:1] * w_ref[j, 0]
        for k in range(1, IN_FEATURES):
            acc = acc + x[:, k:k + 1] * w_ref[j, k]
        cols.append(acc + b_ref[j])
    o_ref[...] = jnp.concatenate(cols, axis=1).astype(o_ref.dtype)


@functools.partial(jax.jit, static_argnames=("tile_b",))
def simple_model_forward(x, weight, bias, *, tile_b=1024):
    """x: (B, 4) f32, weight: (3, 4) f32 (nn.Linear layout), bias: (3,) f32 -> (B, 3) f32."""
    B = x.shape[0]
    # Tile size: a multiple of 8 sublanes, capped at tile_b, no larger than needed.
    tb = min(tile_b, _round_up(B, 8))
    b_pad = _round_up(B, tb)
    if b_pad != B:
        x = jnp.pad(x, ((0, b_pad - B), (0, 0)))
    grid = (b_pad // tb,)

    out = pl.pallas_call(
        linear_kernel,
        out_shape=jax.ShapeDtypeStruct((b_pad, OUT_FEATURES), x.dtype),
        grid_spec=pl.GridSpec(
            grid=grid,
            in_specs=[
                # x streams through VMEM, one batch tile per grid step.
                pl.BlockSpec((tb, IN_FEATURES), lambda i: (i, 0)),
                # 48 B of weights + 12 B of bias: resident in SMEM for the
                # whole launch, read as scalars inside the kernel.
                pl.BlockSpec(memory_space=pltpu.MemorySpace.SMEM),
                pl.BlockSpec(memory_space=pltpu.MemorySpace.SMEM),
            ],
            out_specs=pl.BlockSpec((tb, OUT_FEATURES), lambda i: (i, 0)),
        ),
        compiler_params=pltpu.CompilerParams(
            dimension_semantics=("parallel",),
        ),
    )(x, weight, bias)
    return out[:B]


if __name__ == "__main__":
    key = jax.random.PRNGKey(0)
    kx, kw, kb, kx2 = jax.random.split(key, 4)

    # Deterministic parameters with nn.Linear(4, 3) shapes and init bounds.
    bound = 1.0 / (IN_FEATURES ** 0.5)
    weight = jax.random.uniform(
        kw, (OUT_FEATURES, IN_FEATURES), jnp.float32, -bound, bound
    )
    bias = jax.random.uniform(kb, (OUT_FEATURES,), jnp.float32, -bound, bound)

    # Small example input matching the module's forward contract: (batch, 4).
    x = jax.random.normal(kx, (2, IN_FEATURES), jnp.float32)
    out = jax.block_until_ready(simple_model_forward(x, weight, bias))
    ref = x @ weight.T + bias
    assert out.shape == (2, OUT_FEATURES)
    assert jnp.allclose(out, ref, atol=1e-5, rtol=1e-5)

    # Exercise the multi-tile / ragged-tail path with a tiny tile size.
    x2 = jax.random.normal(kx2, (20, IN_FEATURES), jnp.float32)
    out2 = jax.block_until_ready(simple_model_forward(x2, weight, bias, tile_b=8))
    ref2 = x2 @ weight.T + bias
    assert out2.shape == (20, OUT_FEATURES)
    assert jnp.allclose(out2, ref2, atol=1e-5, rtol=1e-5)

    print("KERNEL_OK")
</pallas_src>

<mosaic_0001>
module attributes {stable_mosaic.version = 11 : i64} {
  func.func @linear_kernel(%arg0: i32, %arg1: memref<8x4xf32, #tpu.memory_space<vmem>>, %arg2: memref<3x4xf32, #tpu.memory_space<smem>>, %arg3: memref<3xf32, #tpu.memory_space<smem>>, %arg4: memref<8x3xf32, #tpu.memory_space<vmem>>) attributes {dimension_semantics = [#tpu.dimension_semantics<parallel>], iteration_bounds = array<i64: 1>, scalar_prefetch = 0 : i64, scratch_operands = 0 : i64, tpu.core_type = #tpu.core_type<tc>, window_params = [{transform_indices = @transform_0, window_bounds = array<i64: 8, 4>}, {transform_indices = @transform_1, window_bounds = array<i64: 3, 4>}, {transform_indices = @transform_2, window_bounds = array<i64: 3>}, {transform_indices = @transform_3, window_bounds = array<i64: 8, 3>}]} {
    %c0 = arith.constant 0 : index
    %c0_0 = arith.constant 0 : index
    %0 = vector.load %arg1[%c0, %c0_0] : memref<8x4xf32, #tpu.memory_space<vmem>>, vector<8x4xf32>
    %1 = vector.extract_strided_slice %0 {offsets = [0, 0], sizes = [8, 1], strides = [1, 1]} : vector<8x4xf32> to vector<8x1xf32>
    %c0_1 = arith.constant 0 : index
    %c0_2 = arith.constant 0 : index
    %2 = memref.load %arg2[%c0_1, %c0_2] : memref<3x4xf32, #tpu.memory_space<smem>>
    %3 = vector.broadcast %2 : f32 to vector<8x1xf32>
    %4 = arith.mulf %1, %3 : vector<8x1xf32>
    %5 = vector.extract_strided_slice %0 {offsets = [0, 1], sizes = [8, 1], strides = [1, 1]} : vector<8x4xf32> to vector<8x1xf32>
    %c0_3 = arith.constant 0 : index
    %c1 = arith.constant 1 : index
    %6 = memref.load %arg2[%c0_3, %c1] : memref<3x4xf32, #tpu.memory_space<smem>>
    %7 = vector.broadcast %6 : f32 to vector<8x1xf32>
    %8 = arith.mulf %5, %7 : vector<8x1xf32>
    %9 = arith.addf %4, %8 : vector<8x1xf32>
    %10 = vector.extract_strided_slice %0 {offsets = [0, 2], sizes = [8, 1], strides = [1, 1]} : vector<8x4xf32> to vector<8x1xf32>
    %c0_4 = arith.constant 0 : index
    %c2 = arith.constant 2 : index
    %11 = memref.load %arg2[%c0_4, %c2] : memref<3x4xf32, #tpu.memory_space<smem>>
    %12 = vector.broadcast %11 : f32 to vector<8x1xf32>
    %13 = arith.mulf %10, %12 : vector<8x1xf32>
    %14 = arith.addf %9, %13 : vector<8x1xf32>
    %15 = vector.extract_strided_slice %0 {offsets = [0, 3], sizes = [8, 1], strides = [1, 1]} : vector<8x4xf32> to vector<8x1xf32>
    %c0_5 = arith.constant 0 : index
    %c3 = arith.constant 3 : index
    %16 = memref.load %arg2[%c0_5, %c3] : memref<3x4xf32, #tpu.memory_space<smem>>
    %17 = vector.broadcast %16 : f32 to vector<8x1xf32>
    %18 = arith.mulf %15, %17 : vector<8x1xf32>
    %19 = arith.addf %14, %18 : vector<8x1xf32>
    %c0_6 = arith.constant 0 : index
    %20 = memref.load %arg3[%c0_6] : memref<3xf32, #tpu.memory_space<smem>>
    %21 = vector.broadcast %20 : f32 to vector<8x1xf32>
    %22 = arith.addf %19, %21 : vector<8x1xf32>
    %23 = vector.extract_strided_slice %0 {offsets = [0, 0], sizes = [8, 1], strides = [1, 1]} : vector<8x4xf32> to vector<8x1xf32>
    %c1_7 = arith.constant 1 : index
    %c0_8 = arith.constant 0 : index
    %24 = memref.load %arg2[%c1_7, %c0_8] : memref<3x4xf32, #tpu.memory_space<smem>>
    %25 = vector.broadcast %24 : f32 to vector<8x1xf32>
    %26 = arith.mulf %23, %25 : vector<8x1xf32>
    %27 = vector.extract_strided_slice %0 {offsets = [0, 1], sizes = [8, 1], strides = [1, 1]} : vector<8x4xf32> to vector<8x1xf32>
    %c1_9 = arith.constant 1 : index
    %c1_10 = arith.constant 1 : index
    %28 = memref.load %arg2[%c1_9, %c1_10] : memref<3x4xf32, #tpu.memory_space<smem>>
    %29 = vector.broadcast %28 : f32 to vector<8x1xf32>
    %30 = arith.mulf %27, %29 : vector<8x1xf32>
    %31 = arith.addf %26, %30 : vector<8x1xf32>
    %32 = vector.extract_strided_slice %0 {offsets = [0, 2], sizes = [8, 1], strides = [1, 1]} : vector<8x4xf32> to vector<8x1xf32>
    %c1_11 = arith.constant 1 : index
    %c2_12 = arith.constant 2 : index
    %33 = memref.load %arg2[%c1_11, %c2_12] : memref<3x4xf32, #tpu.memory_space<smem>>
    %34 = vector.broadcast %33 : f32 to vector<8x1xf32>
    %35 = arith.mulf %32, %34 : vector<8x1xf32>
    %36 = arith.addf %31, %35 : vector<8x1xf32>
    %37 = vector.extract_strided_slice %0 {offsets = [0, 3], sizes = [8, 1], strides = [1, 1]} : vector<8x4xf32> to vector<8x1xf32>
    %c1_13 = arith.constant 1 : index
    %c3_14 = arith.constant 3 : index
    %38 = memref.load %arg2[%c1_13, %c3_14] : memref<3x4xf32, #tpu.memory_space<smem>>
    %39 = vector.broadcast %38 : f32 to vector<8x1xf32>
    %40 = arith.mulf %37, %39 : vector<8x1xf32>
    %41 = arith.addf %36, %40 : vector<8x1xf32>
    %c1_15 = arith.constant 1 : index
    %42 = memref.load %arg3[%c1_15] : memref<3xf32, #tpu.memory_space<smem>>
    %43 = vector.broadcast %42 : f32 to vector<8x1xf32>
    %44 = arith.addf %41, %43 : vector<8x1xf32>
    %45 = vector.extract_strided_slice %0 {offsets = [0, 0], sizes = [8, 1], strides = [1, 1]} : vector<8x4xf32> to vector<8x1xf32>
    %c2_16 = arith.constant 2 : index
    %c0_17 = arith.constant 0 : index
    %46 = memref.load %arg2[%c2_16, %c0_17] : memref<3x4xf32, #tpu.memory_space<smem>>
    %47 = vector.broadcast %46 : f32 to vector<8x1xf32>
    %48 = arith.mulf %45, %47 : vector<8x1xf32>
    %49 = vector.extract_strided_slice %0 {offsets = [0, 1], sizes = [8, 1], strides = [1, 1]} : vector<8x4xf32> to vector<8x1xf32>
    %c2_18 = arith.constant 2 : index
    %c1_19 = arith.constant 1 : index
    %50 = memref.load %arg2[%c2_18, %c1_19] : memref<3x4xf32, #tpu.memory_space<smem>>
    %51 = vector.broadcast %50 : f32 to vector<8x1xf32>
    %52 = arith.mulf %49, %51 : vector<8x1xf32>
    %53 = arith.addf %48, %52 : vector<8x1xf32>
    %54 = vector.extract_strided_slice %0 {offsets = [0, 2], sizes = [8, 1], strides = [1, 1]} : vector<8x4xf32> to vector<8x1xf32>
    %c2_20 = arith.constant 2 : index
    %c2_21 = arith.constant 2 : index
    %55 = memref.load %arg2[%c2_20, %c2_21] : memref<3x4xf32, #tpu.memory_space<smem>>
    %56 = vector.broadcast %55 : f32 to vector<8x1xf32>
    %57 = arith.mulf %54, %56 : vector<8x1xf32>
    %58 = arith.addf %53, %57 : vector<8x1xf32>
    %59 = vector.extract_strided_slice %0 {offsets = [0, 3], sizes = [8, 1], strides = [1, 1]} : vector<8x4xf32> to vector<8x1xf32>
    %c2_22 = arith.constant 2 : index
    %c3_23 = arith.constant 3 : index
    %60 = memref.load %arg2[%c2_22, %c3_23] : memref<3x4xf32, #tpu.memory_space<smem>>
    %61 = vector.broadcast %60 : f32 to vector<8x1xf32>
    %62 = arith.mulf %59, %61 : vector<8x1xf32>
    %63 = arith.addf %58, %62 : vector<8x1xf32>
    %c2_24 = arith.constant 2 : index
    %64 = memref.load %arg3[%c2_24] : memref<3xf32, #tpu.memory_space<smem>>
    %65 = vector.broadcast %64 : f32 to vector<8x1xf32>
    %66 = arith.addf %63, %65 : vector<8x1xf32>
    %67 = tpu.concatenate %22, %44, %66 in 1 : vector<8x1xf32>, vector<8x1xf32>, vector<8x1xf32> -> vector<8x3xf32>
    %c0_25 = arith.constant 0 : index
    %c0_26 = arith.constant 0 : index
    %68 = vector.load %arg4[%c0_25, %c0_26] : memref<8x3xf32, #tpu.memory_space<vmem>>, vector<8x3xf32>
    tpu.vector_store %arg4[%c0_25, %c0_26], %67 {strides = array<i32>} : memref<8x3xf32, #tpu.memory_space<vmem>>, vector<8x3xf32>,
    return
  }
  func.func @transform_0(%arg0: i32) -> (i32, i32) {
    %c0_i32 = arith.constant 0 : i32
    %c0_i32_0 = arith.constant 0 : i32
    return %arg0, %c0_i32 : i32, i32
  }
  func.func @transform_1(%arg0: i32) -> (i32, i32) {
    %c0_i32 = arith.constant 0 : i32
    %c0_i32_0 = arith.constant 0 : i32
    %c0_i32_1 = arith.constant 0 : i32
    return %c0_i32, %c0_i32_0 : i32, i32
  }
  func.func @transform_2(%arg0: i32) -> i32 {
    %c0_i32 = arith.constant 0 : i32
    %c0_i32_0 = arith.constant 0 : i32
    return %c0_i32 : i32
  }
  func.func @transform_3(%arg0: i32) -> (i32, i32) {
    %c0_i32 = arith.constant 0 : i32
    %c0_i32_0 = arith.constant 0 : i32
    return %arg0, %c0_i32 : i32, i32
  }
}

</mosaic_0001>

<bundles_post_ra>
// kernel: simple_model_forward.1
= control target key start
LH: loop header
LB: loop body
LE: loop exit
PB: predicated region body
PF: predicated region fallthrough
CT: control target
= control target key end

     0   :  { %8 = vsyncpa [#allocation3], 0  ;;  %s251_s0 = inlined_call_operand.vmem [shape: f32[8,4], index: 0, kind: input, shape index: {}]   ;;  %s252_s1 = inlined_call_operand.vmem [shape: f32[3,4], index: 1, kind: input, shape index: {}]   ;;  %s253_s2 = inlined_call_operand.vmem [shape: f32[3], index: 2, kind: input, shape index: {}]   ;;  %s254_s3 = inlined_call_operand.vmem [shape: f32[8,3], index: 3, kind: output, shape index: {}]  }
   0x1   :  { %s17_s14 = sshll.u32 %s252_s1, 4  ;;  %s18_s14 = int_to_ptr.vmem [resolvable:$true] %s17_s14 }
   0x2   :  { %9 = vsyncpa [#allocation5], 0  ;;  %s26_s17 = sshll.u32 %s253_s2, 4  ;;  %s198_s18 = smov [#allocation2]   ;;  %s27_s17 = int_to_ptr.vmem [resolvable:$true] %s26_s17 }
   0x3   :  { %20 = dma.vmem_to_smem %s18_s14, 64, %s198_s18, [#allocation3]  }
   0x4   :  { %s199_s19 = smov [#allocation4]  }
   0x5   :  { %29 = dma.vmem_to_smem %s27_s17, 16, %s199_s19, [#allocation5]  }
   0x6   :  { %194 = dma.done.wait [#allocation3], 64  }
   0x7   :  { %195 = vsyncadd [#allocation3], 4294967232 }
   0x8   :  { %196 = dma.done.wait [#allocation5], 16  }
   0x9   :  { %197 = vsyncadd [#allocation5], 4294967280 }
   0xa   :  { %38 = sfence }
   0xb   :  { %s154_s20 = sld [smem:[#allocation2 + $0x81]]  ;;  %v234_v0 = vld [vmem:[%s251_s0] sm:$0xff]  ;;  %s200_s26 = smov 127   ;;  %vm138_vm0 = vcmask 7168   ;;  %vm140_vm1 = vcmask 15360   ;;  %vm142_vm2 = vcmask 23552  }
   0xc   :  { %s155_s21 = sld [smem:[#allocation2 + $0x82]]  ;;  %s201_s27 = smov 126  }
   0xd   :  { %s159_s22 = sld [smem:[#allocation2 + $0x101]]  ;;  %s202_s0 = smov 125  }
   0xe   :  { %s160_s1 = sld [smem:[#allocation2 + $0x102]]  ;;  %s203_s8 = smov 1  }
   0xf   :  { %s156_s2 = sld [smem:[#allocation2 + $0x83]]  ;;  %s204_s9 = smov 2  }
  0x10   :  { %s161_s25 = sld [smem:[#allocation2 + $0x103]] }
  0x11   :  { %v74_v1 = vstv %s154_s20  ;;  %s150_s28 = sld [smem:[#allocation2 + $0x1]] }
  0x12   :  { %v75_v2 = vmul.f32 %v74_v1, %v234_v0  ;;  %v82_v3 = vstv %s155_s21  ;;  %s151_s29 = sld [smem:[#allocation2 + $0x2]] }
  0x13   :  { %v83_v4 = vmul.f32 %v82_v3, %v234_v0  ;;  %v104_v5 = vstv %s159_s22  ;;  %s152_s30 = sld [smem:[#allocation2 + $0x3]] }
  0x14   :  { %77 = vrot.lane.b32.xlu0 %v75_v2, %s200_s26  ;;  %v112_v7 = vstv %s160_s1  ;;  %v105_v9 = vmul.f32 %v104_v5, %v234_v0  ;;  %s153_s4 = sld [smem:[#allocation2 + $0x80]] }
  0x15   :  { %85 = vrot.lane.b32.xlu1 %v83_v4, %s201_s27  ;;  %v90_v6 = vstv %s156_s2  ;;  %v113_v10 = vmul.f32 %v112_v7, %v234_v0  ;;  %s158_s5 = sld [smem:[#allocation2 + $0x100]] }
  0x16   :  { %v91_v8 = vmul.f32 %v90_v6, %v234_v0  ;;  %v120_v11 = vstv %s161_s25  ;;  %s157_s6 = sld [smem:[#allocation4 + $0x1]] }
  0x17   :  { %v121_v12 = vmul.f32 %v120_v11, %v234_v0  ;;  %v44_v13 = vstv %s150_s28  ;;  %s162_s7 = sld [smem:[#allocation4 + $0x2]] }
  0x18   :  { %93 = vrot.lane.b32.xlu2 %v91_v8, %s202_s0  ;;  %v45_v14 = vmul.f32 %v44_v13, %v234_v0  ;;  %v52_v15 = vstv %s151_s29  ;;  %s40_s10 = sld [smem:[#allocation2]] }
  0x19   :  { %v53_v16 = vmul.f32 %v52_v15, %v234_v0  ;;  %v60_v17 = vstv %s152_s30  ;;  %s67_s11 = sld [smem:[#allocation4]] }
  0x1a   :  { %v61_v18 = vmul.f32 %v60_v17, %v234_v0  ;;  %v71_v19 = vstv %s153_s4 }
  0x1b   :  { %v72_v20 = vmul.f32 %v71_v19, %v234_v0  ;;  %v101_v25 = vstv %s158_s5 }
  0x1c   :  { %107 = vrot.lane.b32.xlu0 %v105_v9, %s200_s26  ;;  %v98_v27 = vstv %s157_s6  ;;  %v102_v29 = vmul.f32 %v101_v25, %v234_v0 }
  0x1d   :  { %115 = vrot.lane.b32.xlu1 %v113_v10, %s201_s27  ;;  %v128_v36 = vstv %s162_s7 }
  0x1e   :  { %v41_v39 = vstv %s40_s10 }
  0x1f   :  { %v42_v40 = vmul.f32 %v41_v39, %v234_v0  ;;  %v68_v47 = vstv %s67_s11 }
  0x20   :  { %123 = vrot.lane.b32.xlu2 %v121_v12, %s202_s0 }
  0x24   :  { %47 = vrot.lane.b32.xlu0 %v45_v14, %s200_s26 }
  0x25   :  { %55 = vrot.lane.b32.xlu1 %v53_v16, %s201_s27 }
  0x28   :  { %63 = vrot.lane.b32.xlu2 %v61_v18, %s202_s0 }
  0x72   :  { %v94_v22 = vpop.permute.xlu2 %93 }
  0x7a   :  { %v124_v34 = vpop.permute.xlu2 %123 }
  0x82   :  { %v64_v45 = vpop.permute.xlu2 %63 }
  0x86   :  { %v78_v21 = vpop.permute.xlu0 %77 }
  0x87   :  { %v80_v23 = vadd.f32 %v78_v21, %v72_v20  ;;  %v86_v24 = vpop.permute.xlu1 %85 }
  0x89   :  { %v88_v26 = vadd.f32 %v86_v24, %v80_v23 }
  0x8b   :  { %v96_v28 = vadd.f32 %v94_v22, %v88_v26 }
  0x8d   :  { %v99_v30 = vadd.f32 %v98_v27, %v96_v28 }
  0x8e   :  { %v108_v31 = vpop.permute.xlu0 %107 }
  0x8f   :  { %v110_v32 = vadd.f32 %v108_v31, %v102_v29  ;;  %131 = vrot.lane.b32.xlu0 %v99_v30, %s203_s8  ;;  %v116_v33 = vpop.permute.xlu1 %115 }
  0x91   :  { %v118_v35 = vadd.f32 %v116_v33, %v110_v32 }
  0x93   :  { %v126_v37 = vadd.f32 %v124_v34, %v118_v35 }
  0x95   :  { %v129_v38 = vadd.f32 %v128_v36, %v126_v37 }
  0x96   :  { %v48_v41 = vpop.permute.xlu0 %47 }
  0x97   :  { %135 = vrot.lane.b32.xlu1 %v129_v38, %s204_s9  ;;  %v50_v42 = vadd.f32 %v48_v41, %v42_v40  ;;  %v56_v43 = vpop.permute.xlu1 %55 }
  0x99   :  { %v58_v44 = vadd.f32 %v56_v43, %v50_v42 }
  0x9b   :  { %v66_v46 = vadd.f32 %v64_v45, %v58_v44 }
  0x9d   :  { %v69_v48 = vadd.f32 %v68_v47, %v66_v46 }
 0x101   :  { %v132_v49 = vpop.permute.xlu0 %131 }
 0x102   :  { %v139_v50 = vsel %vm138_vm0, %v69_v48, %v132_v49 }
 0x109   :  { %v136_v51 = vpop.permute.xlu1 %135 }
 0x10a   :  { %v141_v52 = vsel %vm140_vm1, %v139_v50, %v136_v51 }
 0x10b   :  { %143 = vst.msk [vmem:[%s254_s3] sm:$0xff] %vm142_vm2, %v141_v52 }
 0x10c   :  { %148 = vsyncpa [#allocation3], 1 }
 0x10d   :  { %149 = vsyncpa [#allocation5], 1 }

</bundles_post_ra>
